<compile_context>
chip_gen: v5e
topology: v5e:2x2
jax: 0.10.0
libtpu: 0.0.40
codegen_flags: <defaults>
</compile_context>

<pallas_src>
import functools

import jax
import jax.numpy as jnp
from jax.experimental import pallas as pl
from jax.experimental.pallas import tpu as pltpu

LANE = 128


def _round_up(x, m):
    return ((x + m - 1) // m) * m


def _textcnn_kernel(filter_sizes, filter_num, cat_width,
                    emb_ref, wpack_ref, cbias_ref, fcw_ref, fcb_ref, out_ref):
    """Fused text-conv + ReLU + max-over-time + linear classifier.

    emb_ref   : (tb, S, D)        bf16 embedded tokens (one batch tile)
    wpack_ref : (D, NPAD)         bf16 packed conv weights, column = (i, k, f)
    cbias_ref : (1, CAT_PAD)      f32 conv biases, column = (i, f)
    fcw_ref   : (CAT_PAD, OPAD)   f32 classifier weight (transposed, 0-padded)
    fcb_ref   : (1, OPAD)         f32 classifier bias (0-padded)
    out_ref   : (tb, OPAD)        f32 logits (padded lanes stay zero)
    """
    F = filter_num
    tb, S, D = emb_ref.shape

    # One lane-dense MXU matmul covering every filter width and tap:
    #   proj[b*s, (i,k,f)] = sum_d emb[b, s, d] * W_i[f, k, d]
    emb = emb_ref[...].reshape(tb * S, D)                            # bf16
    proj = jnp.dot(emb, wpack_ref[...],
                   preferred_element_type=jnp.float32)               # (tb*S, NPAD)
    proj = proj.reshape(tb, S, -1)

    # Per filter width: shift-and-add over taps on narrow (F-wide) slices,
    # then bias + ReLU + max over time.
    feats = []
    col = 0
    for i, size in enumerate(filter_sizes):
        T = S - size + 1                                             # valid conv length
        acc = proj[:, 0:T, col:col + F]
        for k in range(1, size):
            acc = acc + proj[:, k:k + T, col + k * F:col + (k + 1) * F]
        col += size * F
        bias_i = cbias_ref[0:1, i * F:(i + 1) * F]                   # (1, F)
        hidden = jnp.maximum(acc + bias_i, 0.0)                      # (tb, T, F)
        feats.append(jnp.max(hidden, axis=1))                        # (tb, F)

    # Concatenate pooled features and zero-pad to the lane-dense classifier K.
    n_feat = F * len(filter_sizes)
    pad = cat_width - n_feat
    if pad > 0:
        feats.append(jnp.zeros((tb, pad), jnp.float32))
    cat = jnp.concatenate(feats, axis=-1)                            # (tb, CAT_PAD)

    # Single classifier matmul (kept f32: tiny K, exact numerics).
    out_ref[...] = jnp.dot(cat, fcw_ref[...],
                           preferred_element_type=jnp.float32) + fcb_ref[...]


def pack_params(params, filter_sizes):
    """Pre-pack / pre-transpose weights into lane-dense, MXU-friendly layouts."""
    F = params["conv_w"][0].shape[0]
    D = params["embedding"].shape[1]
    out_dim = params["fc_w"].shape[0]
    n = len(filter_sizes)

    n_taps = sum(filter_sizes) * F
    npad = _round_up(n_taps, LANE)
    cat_pad = _round_up(n * F, LANE)
    opad = _round_up(out_dim, LANE)

    wpack = jnp.zeros((D, npad), jnp.float32)
    col = 0
    for i, size in enumerate(filter_sizes):
        # (F, size, D) -> (D, size, F) -> (D, size*F), column index = k*F + f
        w = jnp.transpose(params["conv_w"][i], (2, 1, 0)).reshape(D, size * F)
        wpack = wpack.at[:, col:col + size * F].set(w)
        col += size * F

    cbias = jnp.zeros((1, cat_pad), jnp.float32)
    for i in range(n):
        cbias = cbias.at[0, i * F:(i + 1) * F].set(params["conv_b"][i])

    fcw = jnp.zeros((cat_pad, opad), jnp.float32)
    fcw = fcw.at[:n * F, :out_dim].set(params["fc_w"].T)
    fcb = jnp.zeros((1, opad), jnp.float32)
    fcb = fcb.at[0, :out_dim].set(params["fc_b"])

    return dict(wpack=wpack.astype(jnp.bfloat16), cbias=cbias,
                fcw=fcw, fcb=fcb, npad=npad, cat_pad=cat_pad, opad=opad)


def textcnn_forward(token_ids, params, filter_sizes):
    filter_sizes = tuple(filter_sizes)
    F = params["conv_w"][0].shape[0]
    out_dim = params["fc_w"].shape[0]
    B, S = token_ids.shape
    D = params["embedding"].shape[1]

    packed = pack_params(params, filter_sizes)
    npad, cat_pad, opad = packed["npad"], packed["cat_pad"], packed["opad"]

    # Embedding gather (glue) in plain JAX; bf16 halves HBM traffic for the
    # dominant (B, S, D) activation feeding the MXU.
    # TODO(synk): for large B*S, move the gather into the kernel with
    # PrefetchScalarGridSpec (token_ids as scalar prefetch) to avoid
    # materializing emb in HBM at all.
    emb = params["embedding"][token_ids].astype(jnp.bfloat16)        # (B, S, D)

    # Batch tiling: single block for small B, 128-row tiles (with zero padding)
    # otherwise.  128 rows of bf16 (S, D) comfortably fits v7x's tighter VMEM
    # with double buffering.
    tb = B if B <= 128 else 128
    b_pad = _round_up(B, tb)
    if b_pad != B:
        emb = jnp.pad(emb, ((0, b_pad - B), (0, 0), (0, 0)))
    grid = (b_pad // tb,)

    kernel = functools.partial(_textcnn_kernel, filter_sizes, F, cat_pad)
    out_padded = pl.pallas_call(
        kernel,
        out_shape=jax.ShapeDtypeStruct((b_pad, opad), jnp.float32),
        grid=grid,
        in_specs=[
            pl.BlockSpec((tb, S, D), lambda b: (b, 0, 0)),
            pl.BlockSpec((D, npad), lambda b: (0, 0)),
            pl.BlockSpec((1, cat_pad), lambda b: (0, 0)),
            pl.BlockSpec((cat_pad, opad), lambda b: (0, 0)),
            pl.BlockSpec((1, opad), lambda b: (0, 0)),
        ],
        out_specs=pl.BlockSpec((tb, opad), lambda b: (b, 0)),
        compiler_params=pltpu.CompilerParams(
            dimension_semantics=("parallel",)),
    )(emb, packed["wpack"], packed["cbias"], packed["fcw"], packed["fcb"])

    return out_padded[:B, :out_dim]


def init_params(key, vocab_size, input_dim, out_dim, filter_num, filter_sizes):
    keys = jax.random.split(key, 3 + 2 * len(filter_sizes))
    emb = jax.random.normal(keys[0], (vocab_size, input_dim), jnp.float32) * 0.1
    emb = emb.at[0].set(0.0)  # padding_idx=0
    conv_w, conv_b = [], []
    for i, size in enumerate(filter_sizes):
        conv_w.append(jax.random.normal(keys[1 + 2 * i],
                                        (filter_num, size, input_dim),
                                        jnp.float32) * 0.1)
        conv_b.append(jax.random.normal(keys[2 + 2 * i],
                                        (filter_num,), jnp.float32) * 0.1)
    fc_w = jax.random.normal(keys[-2],
                             (out_dim, filter_num * len(filter_sizes)),
                             jnp.float32) * 0.1
    fc_b = jax.random.normal(keys[-1], (out_dim,), jnp.float32) * 0.1
    return dict(embedding=emb, conv_w=conv_w, conv_b=conv_b, fc_w=fc_w, fc_b=fc_b)


def textcnn_reference(token_ids, params, filter_sizes):
    emb = params["embedding"][token_ids]
    feats = []
    for i, size in enumerate(filter_sizes):
        W = params["conv_w"][i]                                      # (F, size, D)
        b = params["conv_b"][i]
        T = emb.shape[1] - size + 1
        conv = jnp.stack(
            [jnp.einsum("bsd,fsd->bf", emb[:, t:t + size, :], W) for t in range(T)],
            axis=1) + b                                              # (B, T, F)
        feats.append(jnp.max(jax.nn.relu(conv), axis=1))             # (B, F)
    cat = jnp.concatenate(feats, axis=-1)
    return cat @ params["fc_w"].T + params["fc_b"]


if __name__ == "__main__":
    # Small shapes consistent with the module's forward.
    vocab_size = 50
    input_dim = 32      # embedding dim
    out_dim = 4         # number of classes
    filter_num = 8
    filter_sizes = (2, 3, 4)
    batch, seq_len = 2, 8

    key = jax.random.PRNGKey(0)
    k_param, k_tok = jax.random.split(key)
    params = init_params(k_param, vocab_size, input_dim, out_dim,
                         filter_num, filter_sizes)
    token_ids = jax.random.randint(k_tok, (batch, seq_len), 0, vocab_size,
                                   dtype=jnp.int32)

    out = textcnn_forward(token_ids, params, filter_sizes)
    out = jax.block_until_ready(out)

    ref = textcnn_reference(token_ids, params, filter_sizes)
    assert out.shape == (batch, out_dim)
    # bf16 MXU inputs -> small numeric drift vs. the f32 reference.
    assert jnp.allclose(out, ref, rtol=2e-2, atol=2e-2), (out, ref)

    print("KERNEL_OK")
</pallas_src>

<mosaic_0001>
module attributes {stable_mosaic.version = 11 : i64} {
  func.func @_textcnn_kernel(%arg0: i32, %arg1: memref<2x8x32xbf16, #tpu.memory_space<vmem>>, %arg2: memref<32x128xbf16, #tpu.memory_space<vmem>>, %arg3: memref<1x128xf32, #tpu.memory_space<vmem>>, %arg4: memref<128x128xf32, #tpu.memory_space<vmem>>, %arg5: memref<1x128xf32, #tpu.memory_space<vmem>>, %arg6: memref<2x128xf32, #tpu.memory_space<vmem>>) attributes {dimension_semantics = [#tpu.dimension_semantics<parallel>], iteration_bounds = array<i64: 1>, scalar_prefetch = 0 : i64, scratch_operands = 0 : i64, tpu.core_type = #tpu.core_type<tc>, window_params = [{transform_indices = @transform_0, window_bounds = array<i64: 2, 8, 32>}, {pipeline_mode = #tpu.pipeline_mode<synchronous>, transform_indices = @transform_1, window_bounds = array<i64: 32, 128>}, {pipeline_mode = #tpu.pipeline_mode<synchronous>, transform_indices = @transform_2, window_bounds = array<i64: 1, 128>}, {pipeline_mode = #tpu.pipeline_mode<synchronous>, transform_indices = @transform_3, window_bounds = array<i64: 128, 128>}, {pipeline_mode = #tpu.pipeline_mode<synchronous>, transform_indices = @transform_4, window_bounds = array<i64: 1, 128>}, {transform_indices = @transform_5, window_bounds = array<i64: 2, 128>}]} {
    %c0 = arith.constant 0 : index
    %c0_0 = arith.constant 0 : index
    %c0_1 = arith.constant 0 : index
    %0 = vector.load %arg1[%c0, %c0_0, %c0_1] : memref<2x8x32xbf16, #tpu.memory_space<vmem>>, vector<2x8x32xbf16>
    %1 = vector.shape_cast %0 : vector<2x8x32xbf16> to vector<16x32xbf16>
    %c0_2 = arith.constant 0 : index
    %c0_3 = arith.constant 0 : index
    %2 = vector.load %arg2[%c0_2, %c0_3] : memref<32x128xbf16, #tpu.memory_space<vmem>>, vector<32x128xbf16>
    %cst = arith.constant dense<0.000000e+00> : vector<16x128xf32>
    %3 = tpu.matmul %1, %2, %cst {dimension_numbers = #tpu.dot_dimension_numbers<[1], [0], [0], [1], [0, 0, 1, 1], [], []>} : vector<16x32xbf16>, vector<32x128xbf16>, vector<16x128xf32> -> vector<16x128xf32>
    %4 = vector.shape_cast %3 : vector<16x128xf32> to vector<2x8x128xf32>
    %5 = vector.extract_strided_slice %4 {offsets = [0, 0, 0], sizes = [2, 7, 8], strides = [1, 1, 1]} : vector<2x8x128xf32> to vector<2x7x8xf32>
    %6 = vector.extract_strided_slice %4 {offsets = [0, 1, 8], sizes = [2, 7, 8], strides = [1, 1, 1]} : vector<2x8x128xf32> to vector<2x7x8xf32>
    %7 = arith.addf %5, %6 : vector<2x7x8xf32>
    %c0_4 = arith.constant 0 : index
    %c0_5 = arith.constant 0 : index
    %8 = vector.load %arg3[%c0_4, %c0_5] : memref<1x128xf32, #tpu.memory_space<vmem>>, vector<1x8xf32>
    %9 = vector.shape_cast %8 : vector<1x8xf32> to vector<1x1x8xf32>
    %10 = vector.broadcast %9 : vector<1x1x8xf32> to vector<2x7x8xf32>
    %11 = arith.addf %7, %10 : vector<2x7x8xf32>
    %cst_6 = arith.constant 0.000000e+00 : f32
    %12 = vector.broadcast %cst_6 : f32 to vector<2x7x8xf32>
    %13 = arith.maximumf %11, %12 : vector<2x7x8xf32>
    %cst_7 = arith.constant dense<0xFF800000> : vector<2x8xf32>
    %14 = vector.multi_reduction <maximumf>, %13, %cst_7 [1] : vector<2x7x8xf32> to vector<2x8xf32>
    %15 = vector.extract_strided_slice %4 {offsets = [0, 0, 16], sizes = [2, 6, 8], strides = [1, 1, 1]} : vector<2x8x128xf32> to vector<2x6x8xf32>
    %16 = vector.extract_strided_slice %4 {offsets = [0, 1, 24], sizes = [2, 6, 8], strides = [1, 1, 1]} : vector<2x8x128xf32> to vector<2x6x8xf32>
    %17 = arith.addf %15, %16 : vector<2x6x8xf32>
    %18 = vector.extract_strided_slice %4 {offsets = [0, 2, 32], sizes = [2, 6, 8], strides = [1, 1, 1]} : vector<2x8x128xf32> to vector<2x6x8xf32>
    %19 = arith.addf %17, %18 : vector<2x6x8xf32>
    %c0_8 = arith.constant 0 : index
    %c8 = arith.constant 8 : index
    %20 = vector.load %arg3[%c0_8, %c8] : memref<1x128xf32, #tpu.memory_space<vmem>>, vector<1x8xf32>
    %21 = vector.shape_cast %20 : vector<1x8xf32> to vector<1x1x8xf32>
    %22 = vector.broadcast %21 : vector<1x1x8xf32> to vector<2x6x8xf32>
    %23 = arith.addf %19, %22 : vector<2x6x8xf32>
    %cst_9 = arith.constant 0.000000e+00 : f32
    %24 = vector.broadcast %cst_9 : f32 to vector<2x6x8xf32>
    %25 = arith.maximumf %23, %24 : vector<2x6x8xf32>
    %cst_10 = arith.constant dense<0xFF800000> : vector<2x8xf32>
    %26 = vector.multi_reduction <maximumf>, %25, %cst_10 [1] : vector<2x6x8xf32> to vector<2x8xf32>
    %27 = vector.extract_strided_slice %4 {offsets = [0, 0, 40], sizes = [2, 5, 8], strides = [1, 1, 1]} : vector<2x8x128xf32> to vector<2x5x8xf32>
    %28 = vector.extract_strided_slice %4 {offsets = [0, 1, 48], sizes = [2, 5, 8], strides = [1, 1, 1]} : vector<2x8x128xf32> to vector<2x5x8xf32>
    %29 = arith.addf %27, %28 : vector<2x5x8xf32>
    %30 = vector.extract_strided_slice %4 {offsets = [0, 2, 56], sizes = [2, 5, 8], strides = [1, 1, 1]} : vector<2x8x128xf32> to vector<2x5x8xf32>
    %31 = arith.addf %29, %30 : vector<2x5x8xf32>
    %32 = vector.extract_strided_slice %4 {offsets = [0, 3, 64], sizes = [2, 5, 8], strides = [1, 1, 1]} : vector<2x8x128xf32> to vector<2x5x8xf32>
    %33 = arith.addf %31, %32 : vector<2x5x8xf32>
    %c0_11 = arith.constant 0 : index
    %c16 = arith.constant 16 : index
    %34 = vector.load %arg3[%c0_11, %c16] : memref<1x128xf32, #tpu.memory_space<vmem>>, vector<1x8xf32>
    %35 = vector.shape_cast %34 : vector<1x8xf32> to vector<1x1x8xf32>
    %36 = vector.broadcast %35 : vector<1x1x8xf32> to vector<2x5x8xf32>
    %37 = arith.addf %33, %36 : vector<2x5x8xf32>
    %cst_12 = arith.constant 0.000000e+00 : f32
    %38 = vector.broadcast %cst_12 : f32 to vector<2x5x8xf32>
    %39 = arith.maximumf %37, %38 : vector<2x5x8xf32>
    %cst_13 = arith.constant dense<0xFF800000> : vector<2x8xf32>
    %40 = vector.multi_reduction <maximumf>, %39, %cst_13 [1] : vector<2x5x8xf32> to vector<2x8xf32>
    %cst_14 = arith.constant 0.000000e+00 : f32
    %41 = vector.broadcast %cst_14 : f32 to vector<2x104xf32>
    %42 = tpu.concatenate %14, %26, %40, %41 in 1 : vector<2x8xf32>, vector<2x8xf32>, vector<2x8xf32>, vector<2x104xf32> -> vector<2x128xf32>
    %c0_15 = arith.constant 0 : index
    %c0_16 = arith.constant 0 : index
    %43 = vector.load %arg4[%c0_15, %c0_16] : memref<128x128xf32, #tpu.memory_space<vmem>>, vector<128x128xf32>
    %cst_17 = arith.constant dense<0.000000e+00> : vector<2x128xf32>
    %44 = tpu.matmul %42, %43, %cst_17 {dimension_numbers = #tpu.dot_dimension_numbers<[1], [0], [0], [1], [0, 0, 1, 1], [], []>} : vector<2x128xf32>, vector<128x128xf32>, vector<2x128xf32> -> vector<2x128xf32>
    %c0_18 = arith.constant 0 : index
    %c0_19 = arith.constant 0 : index
    %45 = vector.load %arg5[%c0_18, %c0_19] : memref<1x128xf32, #tpu.memory_space<vmem>>, vector<1x128xf32>
    %46 = vector.broadcast %45 : vector<1x128xf32> to vector<2x128xf32>
    %47 = arith.addf %44, %46 : vector<2x128xf32>
    %c0_20 = arith.constant 0 : index
    %c0_21 = arith.constant 0 : index
    %48 = vector.load %arg6[%c0_20, %c0_21] : memref<2x128xf32, #tpu.memory_space<vmem>>, vector<2x128xf32>
    tpu.vector_store %arg6[%c0_20, %c0_21], %47 {strides = array<i32>} : memref<2x128xf32, #tpu.memory_space<vmem>>, vector<2x128xf32>,
    return
  }
  func.func @transform_0(%arg0: i32) -> (i32, i32, i32) {
    %c0_i32 = arith.constant 0 : i32
    %c0_i32_0 = arith.constant 0 : i32
    %c0_i32_1 = arith.constant 0 : i32
    return %arg0, %c0_i32, %c0_i32_0 : i32, i32, i32
  }
  func.func @transform_1(%arg0: i32) -> (i32, i32) {
    %c0_i32 = arith.constant 0 : i32
    %c0_i32_0 = arith.constant 0 : i32
    %c0_i32_1 = arith.constant 0 : i32
    return %c0_i32, %c0_i32_0 : i32, i32
  }
  func.func @transform_2(%arg0: i32) -> (i32, i32) {
    %c0_i32 = arith.constant 0 : i32
    %c0_i32_0 = arith.constant 0 : i32
    %c0_i32_1 = arith.constant 0 : i32
    return %c0_i32, %c0_i32_0 : i32, i32
  }
  func.func @transform_3(%arg0: i32) -> (i32, i32) {
    %c0_i32 = arith.constant 0 : i32
    %c0_i32_0 = arith.constant 0 : i32
    %c0_i32_1 = arith.constant 0 : i32
    return %c0_i32, %c0_i32_0 : i32, i32
  }
  func.func @transform_4(%arg0: i32) -> (i32, i32) {
    %c0_i32 = arith.constant 0 : i32
    %c0_i32_0 = arith.constant 0 : i32
    %c0_i32_1 = arith.constant 0 : i32
    return %c0_i32, %c0_i32_0 : i32, i32
  }
  func.func @transform_5(%arg0: i32) -> (i32, i32) {
    %c0_i32 = arith.constant 0 : i32
    %c0_i32_0 = arith.constant 0 : i32
    return %arg0, %c0_i32 : i32, i32
  }
}

</mosaic_0001>

<bundles_post_ra>
// kernel: tpu_custom_call.1
= control target key start
LH: loop header
LB: loop body
LE: loop exit
PB: predicated region body
PF: predicated region fallthrough
CT: control target
= control target key end

     0   :  { %10 = vsyncpa [#allocation3], 0  ;;  %s497_s0 = inlined_call_operand.hbm [shape: bf16[2,8,32], index: 0, kind: input, shape index: {}]   ;;  %s498_s1 = inlined_call_operand.hbm [shape: bf16[32,128], index: 1, kind: input, shape index: {}]   ;;  %s499_s2 = inlined_call_operand.vmem [shape: f32[1,128], index: 2, kind: input, shape index: {}]   ;;  %s500_s3 = inlined_call_operand.hbm [shape: f32[128,128], index: 3, kind: input, shape index: {}]   ;;  %s501_s4 = inlined_call_operand.vmem [shape: f32[1,128], index: 4, kind: input, shape index: {}]   ;;  %s502_s5 = inlined_call_operand.hbm [shape: f32[2,128], index: 5, kind: output, shape index: {}]  }
   0x1   :  { %11 = vsyncpa [#allocation6], 0 }
   0x2   :  { %12 = vsyncpa [#allocation4], 0  ;;  %s30_s20 = sshll.u32 %s498_s1, 4  ;;  %s424_s21 = smov [#allocation5]   ;;  %s31_s20 = int_to_ptr.hbm [resolvable:$true] %s30_s20 }
   0x3   :  { %s32_s22 = sshll.u32 %s424_s21, 4  ;;  %s17_s25 = sshll.u32 %s497_s0, 4  ;;  %s33_s22 = int_to_ptr.vmem [resolvable:$true] %s32_s22  ;;  %s18_s25 = int_to_ptr.hbm [resolvable:$true] %s17_s25 }
   0x4   :  { %s425_s26 = smov 64   ;;  %s426_s27 = smov 4  }
   0x5   :  { %38 = dma.hbm_to_vmem [thread:$0]  %s31_s20, 256, %s33_s22, [#allocation6], %s425_s26, %s425_s26, %s426_s27  }
   0x6   :  { %s427_s28 = smov [#allocation2]   ;;  %s45_s7 = sshll.u32 %s500_s3, 4  ;;  %s46_s7 = int_to_ptr.hbm [resolvable:$true] %s45_s7 }
   0x7   :  { %s19_s29 = sshll.u32 %s427_s28, 4  ;;  %s428_s1 = smov [#allocation7]   ;;  %s20_s29 = int_to_ptr.vmem [resolvable:$true] %s19_s29 }
   0x8   :  { %25 = dma.hbm_to_vmem [thread:$0]  %s18_s25, 128, %s20_s29, [#allocation3], %s425_s26, %s425_s26, %s426_s27  }
   0x9   :  { %s47_s8 = sshll.u32 %s428_s1, 4  ;;  %s429_s9 = smov 128   ;;  %s48_s8 = int_to_ptr.vmem [resolvable:$true] %s47_s8 }
   0xa   :  { %s430_s10 = smov 8  }
   0xb   :  { %53 = dma.hbm_to_vmem [thread:$0]  %s46_s7, 2048, %s48_s8, [#allocation6], %s429_s9, %s429_s9, %s430_s10  }
   0xc   :  { %418 = dma.done.wait [#allocation3], 128  }
   0xd   :  { %419 = vsyncadd [#allocation3], 4294967168 }
   0xe   :  { %420 = dma.done.wait [#allocation6], 2304  }
   0xf   :  { %421 = vsyncadd [#allocation6], 4294964992  ;;  %v307_v0 = vld [vmem:[#allocation5 + $0x8] sm:$0xff]  ;;  %v306_v1 = vld [vmem:[#allocation5] sm:$0xff]  ;;  %vm92_vm0 = vcmask 261120   ;;  %s431_s0 = smov 104  }
  0x10   :  { %102 = vmatpush.bf16.msra.mxu0 %v307_v0  ;;  %v305_v2 = vld [vmem:[#allocation2] sm:$0xff]  ;;  %s432_s3 = smov 112   ;;  %s433_s11 = smov 120   ;;  %v247_v17 = vld [vmem:[#allocation7 + $0x78] sm:$0xff]  ;;  %v246_v18 = vld [vmem:[#allocation7 + $0x70] sm:$0xff]  ;;  %vm130_vm1 = vcmask 63488  }
  0x11   :  { %v320_v11 = vld [vmem:[%s499_s2] ss:$0 sm:$0xff]  ;;  %s434_s14 = smov 24   ;;  %252 = vmatpush.msra.mxu1 %v247_v17  ;;  %vm194_vm2 = vcmask 389440   ;;  %vm162_vm3 = vcmask 193664   ;;  %vm211_vm4 = vcmask 1041409  }
  0x12   :  { %v245_v20 = vld [vmem:[#allocation7 + $0x68] sm:$0xff]  ;;  %vm226_vm5 = vcmask 64512   ;;  %vm228_vm6 = vcmask 130048   ;;  %vm230_vm7 = vcmask 195584   ;;  %s435_s16 = smov [#allocation8]   ;;  %s280_s20 = sshll.u32 %s502_s5, 4  ;;  %s281_s20 = int_to_ptr.hbm [resolvable:$true] %s280_s20 }
  0x13   :  { %253 = vmatpush.msra.mxu1 %v246_v18  ;;  %s278_s17 = sshll.u32 %s435_s16, 4  ;;  %s279_s17 = int_to_ptr.vmem [resolvable:$true] %s278_s17 }
  0x14   :  { %103 = vmatpush.bf16.msra.mxu0 %v306_v1 }
  0x15   :  { %254 = vmatpush.msra.mxu1 %v245_v20 }
  0x17   :  { %303 = vmatmul.msk.bf16.vlgmr.msra.gmra.mxu0 %vm92_vm0, %v305_v2 }
  0x94   :  { %v105_v3 = vpop.f32.mrf.mxu0 }
  0x95   :  { %v177_v4 = vrot.slane %v105_v3, 3  ;;  %v145_v5 = vrot.slane %v105_v3, 2  ;;  %v112_v6 = vrot.slane %v105_v3, 1 }
  0x97   :  { %179 = vrot.lane.b32.xlu2 %v177_v4, %s431_s0  ;;  %147 = vrot.lane.b32.xlu1 %v145_v5, %s432_s3 }
  0x98   :  { %114 = vrot.lane.b32.xlu0 %v112_v6, %s433_s11 }
  0x9c   :  { %v107_v7 = vpop.f32.mrf.mxu0 }
  0x9d   :  { %v113_v8 = vrot.slane %v107_v7, 1  ;;  %v146_v9 = vrot.slane %v107_v7, 2  ;;  %v178_v10 = vrot.slane %v107_v7, 3 }
  0x9f   :  { %181 = vrot.lane.b32.xlu2 %v178_v10, %s431_s0  ;;  %149 = vrot.lane.b32.xlu1 %v146_v9, %s432_s3 }
  0xa0   :  { %116 = vrot.lane.b32.xlu0 %v113_v8, %s433_s11 }
  0xa7   :  { %187 = vrot.lane.b32.xlu1 %v320_v11, %s434_s14 }
  0xa8   :  { %155 = vrot.lane.b32.xlu0 %v320_v11, %s430_s10 }
  0xf1   :  { %v180_v15 = vpop.permute.xlu2 %179 }
  0xf9   :  { %v182_v30 = vpop.permute.xlu2 %181 }
 0x109   :  { %v148_v12 = vpop.permute.xlu1 %147 }
 0x10a   :  { %v115_v13 = vpop.permute.xlu0 %114 }
 0x10b   :  { %v120_v14 = vadd.f32 %v115_v13, %v105_v3 }
 0x10d   :  { %v126_v16 = vadd.f32 %v320_v11, %v120_v14  ;;  %v153_v27 = vadd.f32 %v148_v12, %v120_v14 }
 0x10f   :  { %v128_v19 = vmax.f32 %v126_v16, 0.0  ;;  %v185_v33 = vadd.f32 %v180_v15, %v153_v27 }
 0x111   :  { %v131_v21 = vsel %vm130_vm1, %v128_v19, -inf  ;;  %v150_v22 = vpop.permute.xlu1 %149 }
 0x112   :  { %v132_v23 = vrot.slane %v131_v21, 4  ;;  %v117_v24 = vpop.permute.xlu0 %116 }
 0x113   :  { %v121_v25 = vadd.f32 %v117_v24, %v107_v7  ;;  %v242_v24 = vld [vmem:[#allocation7 + $0x50] sm:$0xff] }
 0x114   :  { %v133_v26 = vmax.f32 %v131_v21, %v132_v23  ;;  %v243_v23 = vld [vmem:[#allocation7 + $0x58] sm:$0xff] }
 0x115   :  { %v127_v28 = vadd.f32 %v320_v11, %v121_v25  ;;  %v154_v29 = vadd.f32 %v150_v22, %v121_v25  ;;  %v244_v22 = vld [vmem:[#allocation7 + $0x60] sm:$0xff]  ;;  %v241_v25 = vld [vmem:[#allocation7 + $0x48] sm:$0xff] }
 0x116   :  { %v134_v32 = vrot.slane %v133_v26, 2  ;;  %255 = vmatpush.msra.mxu1 %v244_v22 }
 0x117   :  { %v129_v31 = vmax.f32 %v127_v28, 0.0  ;;  %v186_v34 = vadd.f32 %v182_v30, %v154_v29  ;;  %v238_v28 = vld [vmem:[#allocation7 + $0x30] sm:$0xff]  ;;  %v236_v30 = vld [vmem:[#allocation7 + $0x20] sm:$0xff] }
 0x118   :  { %v135_v43 = vmax.f32 %v133_v26, %v134_v32  ;;  %256 = vmatpush.msra.mxu1 %v243_v23  ;;  %v240_v26 = vld [vmem:[#allocation7 + $0x40] sm:$0xff]  ;;  %v234_v32 = vld [vmem:[#allocation7 + $0x10] sm:$0xff] }
 0x119   :  { %v138_v35 = vsel %vm130_vm1, %v129_v31, -inf  ;;  %v188_v36 = vpop.permute.xlu1 %187  ;;  %v235_v31 = vld [vmem:[#allocation7 + $0x18] sm:$0xff] }
 0x11a   :  { %v139_v37 = vrot.slane %v138_v35, 4  ;;  %v190_v38 = vadd.f32 %v188_v36, %v185_v33  ;;  %v191_v39 = vadd.f32 %v188_v36, %v186_v34  ;;  %v156_v40 = vpop.permute.xlu0 %155  ;;  %v136_v56 = vrot.slane %v135_v43, 1  ;;  %257 = vmatpush.msra.mxu1 %v242_v24  ;;  %v233_v33 = vld [vmem:[#allocation7 + $0x8] sm:$0xff]  ;;  %v232_v34 = vld [vmem:[#allocation7] sm:$0xff] }
 0x11b   :  { %v158_v41 = vadd.f32 %v156_v40, %v153_v27  ;;  %v159_v42 = vadd.f32 %v156_v40, %v154_v29  ;;  %v239_v27 = vld [vmem:[#allocation7 + $0x38] sm:$0xff]  ;;  %v237_v29 = vld [vmem:[#allocation7 + $0x28] sm:$0xff] }
 0x11c   :  { %v140_v44 = vmax.f32 %v138_v35, %v139_v37  ;;  %v192_v45 = vmax.f32 %v190_v38, 0.0  ;;  %v193_v46 = vmax.f32 %v191_v39, 0.0  ;;  %v137_v5 = vmax.f32 %v135_v43, %v136_v56  ;;  %258 = vmatpush.msra.mxu1 %v241_v25  ;;  %v321_v39 = vld [vmem:[%s501_s4] ss:$0 sm:$0xff] }
 0x11d   :  { %v160_v47 = vmax.f32 %v158_v41, 0.0  ;;  %v161_v48 = vmax.f32 %v159_v42, 0.0 }
 0x11e   :  { %v141_v49 = vrot.slane %v140_v44, 2  ;;  %v195_v50 = vsel %vm194_vm2, %v192_v45, -inf  ;;  %v202_v51 = vsel %vm194_vm2, %v193_v46, -inf  ;;  %259 = vmatpush.msra.mxu1 %v240_v26 }
 0x11f   :  { %v196_v52 = vrot.slane %v195_v50, 4  ;;  %v203_v53 = vrot.slane %v202_v51, 4  ;;  %v163_v54 = vsel %vm162_vm3, %v160_v47, -inf  ;;  %v170_v55 = vsel %vm162_vm3, %v161_v48, -inf }
 0x120   :  { %v142_v57 = vmax.f32 %v140_v44, %v141_v49  ;;  %v164_v58 = vrot.slane %v163_v54, 4  ;;  %v171_v59 = vrot.slane %v170_v55, 4  ;;  %260 = vmatpush.msra.mxu1 %v239_v27 }
 0x121   :  { %v197_v60 = vmax.f32 %v195_v50, %v196_v52  ;;  %v204_v61 = vmax.f32 %v202_v51, %v203_v53 }
 0x122   :  { %v143_v62 = vrot.slane %v142_v57, 1  ;;  %v165_v63 = vmax.f32 %v163_v54, %v164_v58  ;;  %v172_v0 = vmax.f32 %v170_v55, %v171_v59  ;;  %261 = vmatpush.msra.mxu1 %v238_v28 }
 0x123   :  { %v198_v1 = vrot.slane %v197_v60, 2  ;;  %v205_v2 = vrot.slane %v204_v61, 2 }
 0x124   :  { %v166_v3 = vrot.slane %v165_v63, 2  ;;  %v173_v4 = vrot.slane %v172_v0, 2  ;;  %v144_v6 = vmax.f32 %v142_v57, %v143_v62  ;;  %262 = vmatpush.msra.mxu1 %v237_v29 }
 0x125   :  { %v199_v7 = vmax.f32 %v197_v60, %v198_v1  ;;  %v206_v8 = vmax.f32 %v204_v61, %v205_v2 }
 0x126   :  { %v167_v9 = vmax.f32 %v165_v63, %v166_v3  ;;  %v174_v10 = vmax.f32 %v172_v0, %v173_v4  ;;  %v212_v11 = vsel %vm211_vm4, %v144_v6, %v137_v5  ;;  %263 = vmatpush.msra.mxu1 %v236_v30 }
 0x127   :  { %v200_v12 = vrot.slane %v199_v7, 1  ;;  %v207_v13 = vrot.slane %v206_v8, 1 }
 0x128   :  { %v168_v14 = vrot.slane %v167_v9, 1  ;;  %v175_v15 = vrot.slane %v174_v10, 1  ;;  %264 = vmatpush.msra.mxu1 %v235_v31 }
 0x129   :  { %v201_v16 = vmax.f32 %v199_v7, %v200_v12  ;;  %v208_v17 = vmax.f32 %v206_v8, %v207_v13 }
 0x12a   :  { %v169_v18 = vmax.f32 %v167_v9, %v168_v14  ;;  %v176_v19 = vmax.f32 %v174_v10, %v175_v15  ;;  %265 = vmatpush.msra.mxu1 %v234_v32 }
 0x12b   :  { %v222_v20 = vsel %vm211_vm4, %v208_v17, %v201_v16 }
 0x12c   :  { %223 = vrot.lane.b32.xlu0 %v222_v20, %s431_s0  ;;  %v216_v21 = vsel %vm211_vm4, %v176_v19, %v169_v18  ;;  %266 = vmatpush.msra.mxu1 %v233_v33 }
 0x12d   :  { %217 = vrot.lane.b32.xlu2 %v216_v21, %s433_s11 }
 0x12e   :  { %267 = vmatpush.msra.mxu1 %v232_v34 }
 0x187   :  { %v218_v35 = vpop.permute.xlu2 %217 }
 0x188   :  { %v227_v36 = vsel %vm226_vm5, %v212_v11, %v218_v35 }
 0x19e   :  { %v224_v37 = vpop.permute.xlu0 %223 }
 0x19f   :  { %v229_v38 = vsel %vm228_vm6, %v227_v36, %v224_v37 }
 0x1a0   :  { %304 = vmatmul.msk.f32.vlgmr.msra.gmra.mxu1 %vm230_vm7, %v229_v38 }
 0x21d   :  { %v269_v40 = vpop.f32.mrf.mxu1 }
 0x21e   :  { %v270_v41 = vadd.f32 %v321_v39, %v269_v40 }
 0x220   :  { %272 = vst [vmem:[#allocation8] sm:$0x3] %v270_v41 }
 0x221   :  { %283 = dma.vmem_to_hbm [thread:$0]  %s279_s17, 32, %s281_s20, [#allocation4]  }
 0x222   :  { %422 = dma.done.wait [#allocation4], 32  }
 0x223   :  { %423 = vsyncadd [#allocation4], 4294967264 }
 0x224   :  { %288 = vsyncpa [#allocation3], 1 }
 0x225   :  { %289 = vsyncpa [#allocation6], 1 }
 0x226   :  { %290 = vsyncpa [#allocation4], 1 }

</bundles_post_ra>
